<compile_context>
chip_gen: v5e
topology: v5e:2x2
jax: 0.10.0
libtpu: 0.0.40
codegen_flags: <defaults>
</compile_context>

<pallas_src>
import functools

import numpy as np
import jax
import jax.numpy as jnp
from jax.experimental import pallas as pl
from jax.experimental.pallas import tpu as pltpu


# ---------------------------------------------------------------------------
# Parameter construction (deterministic, straight from the module's __init__)
# ---------------------------------------------------------------------------
def make_seasonality_templates(harmonics: int, backcast_size: int, forecast_size: int):
    frequency = np.append(
        np.zeros(1, dtype=float),
        np.arange(harmonics, harmonics / 2 * forecast_size, dtype=float) / harmonics,
    )[None, :]
    backcast_grid = (
        -2 * np.pi * (np.arange(backcast_size, dtype=float)[:, None] / forecast_size) * frequency
    )
    forecast_grid = (
        2 * np.pi * (np.arange(forecast_size, dtype=float)[:, None] / forecast_size) * frequency
    )
    backcast_cos = np.transpose(np.cos(backcast_grid)).astype(np.float32)
    backcast_sin = np.transpose(np.sin(backcast_grid)).astype(np.float32)
    backcast_template = np.concatenate([backcast_cos, backcast_sin], axis=0)  # (P, Tb)
    forecast_cos = np.transpose(np.cos(forecast_grid)).astype(np.float32)
    forecast_sin = np.transpose(np.sin(forecast_grid)).astype(np.float32)
    forecast_template = np.concatenate([forecast_cos, forecast_sin], axis=0)  # (P, Tf)
    return backcast_template, forecast_template


def make_fused_basis(backcast_template: np.ndarray,
                     forecast_template: np.ndarray,
                     out_features: int) -> np.ndarray:
    """Block-diagonal fused basis W such that theta @ W yields [backcast | forecast_flat]
    with forecast_flat already in the (B, Tf, Q)-row-major layout of the torch module."""
    P, Tb = backcast_template.shape
    P2, Tf = forecast_template.shape
    assert P == P2
    Q = out_features
    W = np.zeros((P * (1 + Q), Tb + Tf * Q), dtype=np.float32)
    W[:P, :Tb] = backcast_template
    # kron(forecast_basis, I_Q)[(p*Q+q'), (t*Q+q)] = fb[p,t] * delta(q,q')
    W[P:, Tb:] = np.kron(forecast_template, np.eye(Q, dtype=np.float32))
    return W


# ---------------------------------------------------------------------------
# Pallas kernel: one MXU matmul per batch tile, f32 accumulator split into the
# two output refs (backcast, forecast-flat) inside the kernel.
# ---------------------------------------------------------------------------
def _seasonality_kernel(theta_ref, w_ref, back_ref, fore_ref):
    acc = jnp.dot(theta_ref[...], w_ref[...], preferred_element_type=jnp.float32)
    tb_cols = back_ref.shape[-1]
    back_ref[...] = acc[:, :tb_cols].astype(back_ref.dtype)
    fore_ref[...] = acc[:, tb_cols:].astype(fore_ref.dtype)


# ---------------------------------------------------------------------------
# Tiling / VMEM helpers (all trace-time Python)
# ---------------------------------------------------------------------------
def _round_up(x, m):
    return (x + m - 1) // m * m


def _cdiv(a, b):
    return (a + b - 1) // b


def _vmem_budget_bytes():
    """Generation-aware VMEM budget: ~3/4 of physical VMEM (48 MiB on v7x, 96 MiB on v5e/v6e)."""
    cap = 64 * 1024 * 1024  # conservative fallback (v7x per-TC VMEM)
    try:
        info = pltpu.get_tpu_info()
        cap = int(getattr(info, "vmem_capacity_bytes", cap) or cap)
    except Exception:
        pass
    return (3 * cap) // 4


def _choose_batch_tile(B, d_in, d_back, d_fore, theta_bytes, out_bytes, basis_bytes,
                       vmem_budget):
    sub = 16  # sublane multiple safe for both f32 (8) and bf16 (16) packing

    # Lane(128)-padded footprints: real VMEM tiles are padded, so count padded bytes.
    d_in_l = _round_up(d_in, 128)
    d_back_l = _round_up(d_back, 128)
    d_fore_l = _round_up(d_fore, 128)
    d_w_l = _round_up(d_back + d_fore, 128)
    d_in_s = _round_up(d_in, sub)

    basis_vmem = 2 * d_in_s * d_w_l * basis_bytes  # double-buffered resident basis

    def need(t):
        t = _round_up(t, sub)
        return (2 * t * d_in_l * theta_bytes                 # theta tiles (double buffered)
                + 2 * t * (d_back_l + d_fore_l) * out_bytes  # output tiles (double buffered)
                + basis_vmem)

    tb = 4096  # start large: per-step pipeline overhead (~0.35 us) dominates small tiles
    while tb > sub and need(tb) > vmem_budget:
        tb //= 2
    tb = max(tb, sub)

    # Keep >= ~4 grid steps so a "parallel" 1-D grid shards across v7x's 2 TensorCores.
    steps_cap = max(_round_up(max(_cdiv(B, 4), 1), sub), sub)
    tb = min(tb, steps_cap)
    return tb


# ---------------------------------------------------------------------------
# Wrapper
# ---------------------------------------------------------------------------
@functools.partial(
    jax.jit,
    static_argnames=("backcast_size", "forecast_size", "out_features",
                     "out_dtype", "compute_dtype", "batch_tile"),
)
def seasonality_basis_forward(theta, fused_basis, *, backcast_size, forecast_size,
                              out_features, out_dtype=jnp.float32,
                              compute_dtype=None, batch_tile=None):
    """theta: (B, P*(1+Q)).  Returns (backcast (B, Tb), forecast (B, Tf, Q)) in out_dtype.

    compute_dtype: leave None (default) to stream theta/basis through in their incoming
    dtype (matches the fp32 torch module).  Only set bf16 if the upstream producer already
    emits bf16 — an astype here cannot fuse into the Pallas call and would cost an extra
    HBM pass otherwise.
    """
    B = theta.shape[0]
    d_in, d_out = fused_basis.shape
    Tb, Tf, Q = backcast_size, forecast_size, out_features
    d_back, d_fore = Tb, Tf * Q
    assert d_out == d_back + d_fore
    assert theta.shape[1] == d_in

    if compute_dtype is not None:
        theta = theta.astype(compute_dtype)
        fused_basis = fused_basis.astype(compute_dtype)

    theta_bytes = jnp.dtype(theta.dtype).itemsize
    basis_bytes = jnp.dtype(fused_basis.dtype).itemsize
    out_bytes = jnp.dtype(out_dtype).itemsize

    vmem_budget = _vmem_budget_bytes()
    tb = batch_tile if batch_tile is not None else _choose_batch_tile(
        B, d_in, d_back, d_fore, theta_bytes, out_bytes, basis_bytes, vmem_budget)

    grid = (_cdiv(B, tb),)  # ragged last block is masked by Pallas — no padding pass

    back, fore = pl.pallas_call(
        _seasonality_kernel,
        out_shape=(
            jax.ShapeDtypeStruct((B, d_back), out_dtype),
            jax.ShapeDtypeStruct((B, d_fore), out_dtype),
        ),
        grid=grid,
        in_specs=[
            pl.BlockSpec((tb, d_in), lambda i: (i, 0)),
            pl.BlockSpec((d_in, d_out), lambda i: (0, 0)),  # basis resident in VMEM
        ],
        out_specs=(
            pl.BlockSpec((tb, d_back), lambda i: (i, 0)),
            pl.BlockSpec((tb, d_fore), lambda i: (i, 0)),
        ),
        compiler_params=pltpu.CompilerParams(
            dimension_semantics=("parallel",),
            vmem_limit_bytes=int(max(vmem_budget, 32 * 1024 * 1024)),
        ),
        cost_estimate=pl.CostEstimate(
            flops=int(2 * B * d_in * d_out),
            transcendentals=0,
            bytes_accessed=int(B * d_in * theta_bytes
                               + d_in * d_out * basis_bytes
                               + B * d_out * out_bytes),
        ),
    )(theta, fused_basis)

    forecast = fore.reshape(B, Tf, Q)  # row-major metadata-only reshape
    return back, forecast


# ---------------------------------------------------------------------------
# Demo / self-check
# ---------------------------------------------------------------------------
if __name__ == "__main__":
    harmonics = 2
    backcast_size = 16
    forecast_size = 8
    out_features = 2

    bb_np, fb_np = make_seasonality_templates(harmonics, backcast_size, forecast_size)
    W_np = make_fused_basis(bb_np, fb_np, out_features)
    P = fb_np.shape[0]                      # harmonic_size
    theta_dim = P * (1 + out_features)

    backcast_basis = jnp.asarray(bb_np)
    forecast_basis = jnp.asarray(fb_np)
    fused_basis = jnp.asarray(W_np)

    def reference(theta):
        bt = theta[:, :P]
        ft = theta[:, P:].reshape(theta.shape[0], P, -1)
        back = jnp.einsum("bp,pt->bt", bt, backcast_basis)
        fore = jnp.einsum("bpq,pt->btq", ft, forecast_basis)
        return back, fore

    # --- check 1: tiny batch (single partial block), default f32 path ---
    B1 = 4
    theta1 = jax.random.normal(jax.random.PRNGKey(0), (B1, theta_dim), dtype=jnp.float32)
    back1, fore1 = seasonality_basis_forward(
        theta1, fused_basis,
        backcast_size=backcast_size, forecast_size=forecast_size,
        out_features=out_features)
    jax.block_until_ready((back1, fore1))

    back_ref1, fore_ref1 = reference(theta1)
    assert back1.shape == (B1, backcast_size)
    assert fore1.shape == (B1, forecast_size, out_features)
    np.testing.assert_allclose(np.asarray(back1), np.asarray(back_ref1), rtol=1e-5, atol=1e-5)
    np.testing.assert_allclose(np.asarray(fore1), np.asarray(fore_ref1), rtol=1e-5, atol=1e-5)

    # --- check 2: multi-block grid with a ragged last block, auto tile, f32 path ---
    B2 = 300
    theta2 = jax.random.normal(jax.random.PRNGKey(1), (B2, theta_dim), dtype=jnp.float32)
    back2, fore2 = seasonality_basis_forward(
        theta2, fused_basis,
        backcast_size=backcast_size, forecast_size=forecast_size,
        out_features=out_features)
    jax.block_until_ready((back2, fore2))

    back_ref2, fore_ref2 = reference(theta2)
    assert back2.shape == (B2, backcast_size)
    assert fore2.shape == (B2, forecast_size, out_features)
    np.testing.assert_allclose(np.asarray(back2), np.asarray(back_ref2), rtol=1e-5, atol=1e-5)
    np.testing.assert_allclose(np.asarray(fore2), np.asarray(fore_ref2), rtol=1e-5, atol=1e-5)

    # --- check 3: explicit small tile to force several grid steps + ragged masking ---
    back3, fore3 = seasonality_basis_forward(
        theta2, fused_basis,
        backcast_size=backcast_size, forecast_size=forecast_size,
        out_features=out_features, batch_tile=128)
    jax.block_until_ready((back3, fore3))
    np.testing.assert_allclose(np.asarray(back3), np.asarray(back_ref2), rtol=1e-5, atol=1e-5)
    np.testing.assert_allclose(np.asarray(fore3), np.asarray(fore_ref2), rtol=1e-5, atol=1e-5)

    print("KERNEL_OK")
</pallas_src>

<mosaic_0001>
module attributes {stable_mosaic.version = 11 : i64} {
  func.func @_seasonality_kernel(%arg0: i32, %arg1: memref<16x42xf32, #tpu.memory_space<vmem>>, %arg2: memref<42x32xf32, #tpu.memory_space<vmem>>, %arg3: memref<16x16xf32, #tpu.memory_space<vmem>>, %arg4: memref<16x16xf32, #tpu.memory_space<vmem>>) attributes {dimension_semantics = [#tpu.dimension_semantics<parallel>], iteration_bounds = array<i64: 1>, scalar_prefetch = 0 : i64, scratch_operands = 0 : i64, tpu.core_type = #tpu.core_type<tc>, window_params = [{transform_indices = @transform_0, window_bounds = array<i64: 16, 42>}, {pipeline_mode = #tpu.pipeline_mode<synchronous>, transform_indices = @transform_1, window_bounds = array<i64: 42, 32>}, {transform_indices = @transform_2, window_bounds = array<i64: 16, 16>}, {transform_indices = @transform_3, window_bounds = array<i64: 16, 16>}]} {
    %c0 = arith.constant 0 : index
    %c0_0 = arith.constant 0 : index
    %0 = vector.load %arg1[%c0, %c0_0] : memref<16x42xf32, #tpu.memory_space<vmem>>, vector<16x42xf32>
    %c0_1 = arith.constant 0 : index
    %c0_2 = arith.constant 0 : index
    %1 = vector.load %arg2[%c0_1, %c0_2] : memref<42x32xf32, #tpu.memory_space<vmem>>, vector<42x32xf32>
    %cst = arith.constant dense<0.000000e+00> : vector<16x32xf32>
    %2 = tpu.matmul %0, %1, %cst {dimension_numbers = #tpu.dot_dimension_numbers<[1], [0], [0], [1], [0, 0, 1, 1], [], []>} : vector<16x42xf32>, vector<42x32xf32>, vector<16x32xf32> -> vector<16x32xf32>
    %3 = vector.extract_strided_slice %2 {offsets = [0, 0], sizes = [16, 16], strides = [1, 1]} : vector<16x32xf32> to vector<16x16xf32>
    %c0_3 = arith.constant 0 : index
    %c0_4 = arith.constant 0 : index
    %4 = vector.load %arg3[%c0_3, %c0_4] : memref<16x16xf32, #tpu.memory_space<vmem>>, vector<16x16xf32>
    tpu.vector_store %arg3[%c0_3, %c0_4], %3 {strides = array<i32>} : memref<16x16xf32, #tpu.memory_space<vmem>>, vector<16x16xf32>,
    %5 = vector.extract_strided_slice %2 {offsets = [0, 16], sizes = [16, 16], strides = [1, 1]} : vector<16x32xf32> to vector<16x16xf32>
    %c0_5 = arith.constant 0 : index
    %c0_6 = arith.constant 0 : index
    %6 = vector.load %arg4[%c0_5, %c0_6] : memref<16x16xf32, #tpu.memory_space<vmem>>, vector<16x16xf32>
    tpu.vector_store %arg4[%c0_5, %c0_6], %5 {strides = array<i32>} : memref<16x16xf32, #tpu.memory_space<vmem>>, vector<16x16xf32>,
    return
  }
  func.func @transform_0(%arg0: i32) -> (i32, i32) {
    %c0_i32 = arith.constant 0 : i32
    %c0_i32_0 = arith.constant 0 : i32
    return %arg0, %c0_i32 : i32, i32
  }
  func.func @transform_1(%arg0: i32) -> (i32, i32) {
    %c0_i32 = arith.constant 0 : i32
    %c0_i32_0 = arith.constant 0 : i32
    %c0_i32_1 = arith.constant 0 : i32
    return %c0_i32, %c0_i32_0 : i32, i32
  }
  func.func @transform_2(%arg0: i32) -> (i32, i32) {
    %c0_i32 = arith.constant 0 : i32
    %c0_i32_0 = arith.constant 0 : i32
    return %arg0, %c0_i32 : i32, i32
  }
  func.func @transform_3(%arg0: i32) -> (i32, i32) {
    %c0_i32 = arith.constant 0 : i32
    %c0_i32_0 = arith.constant 0 : i32
    return %arg0, %c0_i32 : i32, i32
  }
}

</mosaic_0001>

<bundles_post_ra>
// kernel: seasonality_basis_forward.1
= control target key start
LH: loop header
LB: loop body
LE: loop exit
PB: predicated region body
PF: predicated region fallthrough
CT: control target
= control target key end

     0   :  { %9 = vsyncpa [#allocation3], 0  ;;  %vm29_vm0 = vcmask 1041408   ;;  %vm22_vm1 = vcmask 343040   ;;  %vm56_vm2 = vcmask 130048   ;;  %s221_s0 = inlined_call_operand.vmem [shape: f32[4,42], index: 0, kind: input, shape index: {}]   ;;  %s222_s1 = inlined_call_operand.vmem [shape: f32[42,32], index: 1, kind: input, shape index: {}]   ;;  %s223_s2 = inlined_call_operand.hbm [shape: f32[4,16], index: 2, kind: output, shape index: {0}]   ;;  %s224_s3 = inlined_call_operand.vmem [shape: f32[4,16], index: 3, kind: output, shape index: {1}]  }
   0x1   :  { %v21_v0 = vld [vmem:[%s222_s1 + $0x28] sm:$0x3]  ;;  %v20_v1 = vld [vmem:[%s222_s1 + $0x20] sm:$0xff]  ;;  %v19_v2 = vld [vmem:[%s222_s1 + $0x18] sm:$0xff] }
   0x2   :  { %128 = vmatpush.msk.msra.mxu0 %vm29_vm0, %v21_v0  ;;  %131 = vmatpush.msk.msra.mxu1 %vm29_vm0, %v21_v0  ;;  %v18_v3 = vld [vmem:[%s222_s1 + $0x10] sm:$0xff]  ;;  %v17_v4 = vld [vmem:[%s222_s1 + $0x8] sm:$0xff]  ;;  %v16_v5 = vld [vmem:[%s222_s1] sm:$0xff]  ;;  %s167_s1 = smov 112  }
   0x3   :  { %v14_v6 = vld [vmem:[%s221_s0] sm:$0xff]  ;;  %v15_v7 = vld [vmem:[%s221_s0 + $0x8] sm:$0xff] }
   0x4   :  { %44 = vmatpush.msra.mxu0 %v20_v1  ;;  %132 = vmatpush.msra.mxu1 %v20_v1 }
   0x6   :  { %45 = vmatpush.msra.mxu0 %v19_v2  ;;  %133 = vmatpush.msra.mxu1 %v19_v2 }
   0x8   :  { %46 = vmatpush.msra.mxu0 %v18_v3  ;;  %134 = vmatpush.msra.mxu1 %v18_v3 }
   0xa   :  { %47 = vmatpush.msra.mxu0 %v17_v4  ;;  %135 = vmatpush.msra.mxu1 %v17_v4 }
   0xc   :  { %48 = vmatpush.msra.mxu0 %v16_v5  ;;  %136 = vmatpush.msra.mxu1 %v16_v5 }
   0xd   :  { %129 = vmatmul.msk.f32.vlgmr.msra.gmra.mxu0 %vm22_vm1, %v14_v6  ;;  %130 = vmatmul.msk.f32.vlgmr.msra.gmra.mxu1 %vm22_vm1, %v15_v7 }
  0x8a   :  { %v50_v8 = vpop.f32.mrf.mxu0  ;;  %v53_v9 = vpop.f32.mrf.mxu1 }
  0x8b   :  { %57 = vst.msk [vmem:[#allocation2] sm:$0xff] %vm56_vm2, %v50_v8  ;;  %61 = vrot.lane.b32.xlu0 %v50_v8, %s167_s1 }
  0x8c   :  { %58 = vst.msk [vmem:[#allocation2 + $0x8] sm:$0xff] %vm56_vm2, %v53_v9 }
  0x93   :  { %63 = vrot.lane.b32.xlu0 %v53_v9, %s167_s1 }
  0xfd   :  { %v62_v10 = vpop.permute.xlu0 %61 }
  0xfe   :  { %67 = vst.msk [vmem:[#allocation4] sm:$0xff] %vm56_vm2, %v62_v10 }
 0x105   :  { %v64_v11 = vpop.permute.xlu0 %63 }
 0x106   :  { %72 = vsyncadd [#allocation3], 192  ;;  %s75_s0 = sshll.u32 %s223_s2, 4  ;;  %v100_v12 = vld [vmem:[#allocation4] sm:$0xf]  ;;  %s168_s30 = smov [#allocation2]   ;;  %s76_s0 = int_to_ptr.hbm [resolvable:$true] %s75_s0 }
 0x107   :  { %s73_s4 = sshll.u32 %s168_s30, 4  ;;  %101 = vst [vmem:[%s224_s3] sm:$0xf] %v100_v12  ;;  %s169_s7 = smov 64   ;;  %s74_s4 = int_to_ptr.vmem [resolvable:$true] %s73_s4 }
 0x108   :  { %s170_s8 = smov 4  }
 0x109   :  { %81 = dma.vmem_to_hbm [thread:$0]  %s74_s4, 64, %s76_s0, [#allocation3], %s169_s7, %s169_s7, %s170_s8  }
 0x10a   :  { %165 = dma.done.wait [#allocation3], 256  }
 0x10b   :  { %166 = vsyncadd [#allocation3], 4294967040 }
 0x10c   :  { %123 = vsyncpa [#allocation3], 1 }

</bundles_post_ra>
